<compile_context>
chip_gen: v6e
topology: v6e:2x2x1
jax: 0.10.0
libtpu: 0.0.40
codegen_flags: <defaults>
</compile_context>

<pallas_src>
import jax
import jax.numpy as jnp
from jax.experimental import pallas as pl
from jax.experimental.pallas import tpu as pltpu

_LANE = 128
_SUBLANE = 8


def _round_up(x, m):
    return (x + m - 1) // m * m


def _make_kernel(num_hidden_layers):
    """Kernel: deep MLP (num_hidden_layers x [Linear, ReLU]) followed by the
    fused final layer (deep-last matmul + wide matmul + combined bias) and
    sigmoid.

    Ref order:
      wide_x, deep_x,
      (w_i, b_i) for each hidden layer,
      w_last, w_wide, b_comb,
      out
    """

    def kernel(*refs):
        wide_ref, deep_ref = refs[0], refs[1]
        out_ref = refs[-1]
        params = refs[2:-1]

        # ---- deep hidden layers: Linear + ReLU ----
        # MXU runs in the compute dtype (f32 or bf16) with f32 accumulation;
        # bias add / ReLU stay in f32 (no bf16 VPU dependence -> v5e safe).
        h = deep_ref[...]
        for li in range(num_hidden_layers):
            w = params[2 * li][...]
            b = params[2 * li + 1][...]            # (1, N) float32
            z = jnp.dot(h, w, preferred_element_type=jnp.float32) + b
            h = jnp.maximum(z, 0.0).astype(w.dtype)

        # ---- fused final layer: deep-last + wide share one combined bias ----
        w_last = params[2 * num_hidden_layers][...]
        w_wide = params[2 * num_hidden_layers + 1][...]
        b_comb = params[2 * num_hidden_layers + 2][...]   # (1, out_pad) float32

        logits = (
            jnp.dot(h, w_last, preferred_element_type=jnp.float32)
            + jnp.dot(wide_ref[...], w_wide, preferred_element_type=jnp.float32)
            + b_comb
        )
        out_ref[...] = jax.nn.sigmoid(logits).astype(out_ref.dtype)

    return kernel


def wide_and_deep_forward(wide_input, deep_input, params, *,
                          block_batch=512, compute_dtype=jnp.float32):
    """Forward pass of WideAndDeepModel as one Pallas kernel.

    params: dict with
      'wide_w'  (wide_dim, output_dim), 'wide_b' (1, output_dim),
      'deep_ws' list of (in, out),      'deep_bs' list of (1, out).
    """
    batch = wide_input.shape[0]
    wide_dim = wide_input.shape[1]
    deep_dim = deep_input.shape[1]
    output_dim = params["wide_w"].shape[1]
    num_hidden_layers = len(params["deep_ws"]) - 1   # last deep linear is fused

    # ---- batch tile: up to block_batch rows, multiple of 8 (sublane) ----
    tb = _round_up(min(block_batch, _round_up(batch, _SUBLANE)), _SUBLANE)
    grid = (pl.cdiv(batch, tb),)

    # ---- lane-dense output: pad output feature dim to a multiple of 128 ----
    out_pad = _round_up(output_dim, _LANE)
    pad_n = out_pad - output_dim

    # ---- padded / fused / cast parameters (all done once, outside kernel) ----
    def cast_w(w):
        return w.astype(compute_dtype)

    hidden_ws = [cast_w(w) for w in params["deep_ws"][:-1]]
    hidden_bs = [b.astype(jnp.float32) for b in params["deep_bs"][:-1]]

    w_last_p = cast_w(jnp.pad(params["deep_ws"][-1], ((0, 0), (0, pad_n))))
    w_wide_p = cast_w(jnp.pad(params["wide_w"], ((0, 0), (0, pad_n))))
    b_comb_p = jnp.pad(
        (params["wide_b"] + params["deep_bs"][-1]).astype(jnp.float32),
        ((0, 0), (0, pad_n)),
    )

    flat_params = []
    for w, b in zip(hidden_ws, hidden_bs):
        flat_params.extend([w, b])
    flat_params.extend([w_last_p, w_wide_p, b_comb_p])

    # ---- cast inputs (no batch padding: ragged last block handled by Pallas) --
    wide_x = wide_input.astype(compute_dtype)
    deep_x = deep_input.astype(compute_dtype)

    inputs = [wide_x, deep_x] + flat_params

    # ---- BlockSpecs ----
    def resident_spec(shape):
        # Full-array block, constant index -> DMA'd once, VMEM-resident.
        return pl.BlockSpec(shape, lambda i, _r=len(shape): (0,) * _r)

    in_specs = [
        pl.BlockSpec((tb, wide_dim), lambda i: (i, 0)),
        pl.BlockSpec((tb, deep_dim), lambda i: (i, 0)),
    ] + [resident_spec(p.shape) for p in flat_params]

    out_spec = pl.BlockSpec((tb, out_pad), lambda i: (i, 0))

    # ---- cost estimate (advisory) ----
    matmul_flops = sum(int(w.shape[0]) * int(w.shape[1]) for w in hidden_ws)
    matmul_flops += int(w_last_p.shape[0]) * out_pad + wide_dim * out_pad
    rows = int(grid[0]) * tb
    flops = 2 * rows * matmul_flops
    bytes_accessed = sum(int(x.size) * x.dtype.itemsize for x in inputs)
    bytes_accessed += rows * out_pad * 4
    cost = pl.CostEstimate(
        flops=flops,
        transcendentals=rows * out_pad,
        bytes_accessed=bytes_accessed,
    )

    kernel = _make_kernel(num_hidden_layers)

    out_padded = pl.pallas_call(
        kernel,
        out_shape=jax.ShapeDtypeStruct((batch, out_pad), jnp.float32),
        grid=grid,
        in_specs=in_specs,
        out_specs=out_spec,
        compiler_params=pltpu.CompilerParams(
            dimension_semantics=("parallel",),
        ),
        cost_estimate=cost,
    )(*inputs)

    return out_padded[:, :output_dim]


def reference_forward(wide_input, deep_input, params):
    wide_out = wide_input @ params["wide_w"] + params["wide_b"]
    h = deep_input
    n = len(params["deep_ws"])
    for i, (w, b) in enumerate(zip(params["deep_ws"], params["deep_bs"])):
        h = h @ w + b
        if i < n - 1:
            h = jnp.maximum(h, 0.0)
    return jax.nn.sigmoid(wide_out + h)


def init_params(key, wide_dim, deep_dim, hidden_units, output_dim):
    """Deterministic init mirroring the PyTorch module's parameter shapes
    (nn.Linear weight (out,in) -> stored transposed as (in,out))."""
    ks = jax.random.split(key, 2 + 2 * (len(hidden_units) + 1))
    ki = iter(ks)

    def linear(k, in_dim, out_dim):
        kw, kb = jax.random.split(k)
        bound = 1.0 / jnp.sqrt(in_dim)
        w = jax.random.uniform(kw, (in_dim, out_dim), jnp.float32, -bound, bound)
        b = jax.random.uniform(kb, (1, out_dim), jnp.float32, -bound, bound)
        return w, b

    wide_w, wide_b = linear(next(ki), wide_dim, output_dim)

    deep_dims = [deep_dim] + list(hidden_units) + [output_dim]
    deep_ws, deep_bs = [], []
    for i in range(len(deep_dims) - 1):
        w, b = linear(next(ki), deep_dims[i], deep_dims[i + 1])
        deep_ws.append(w)
        deep_bs.append(b)

    return {"wide_w": wide_w, "wide_b": wide_b, "deep_ws": deep_ws, "deep_bs": deep_bs}


if __name__ == "__main__":
    # Small shapes consistent with the module's forward.
    batch = 8
    wide_dim = 16
    deep_dim = 32
    hidden_units = [64, 32]
    output_dim = 8

    key = jax.random.PRNGKey(0)
    k_wide, k_deep, k_params = jax.random.split(key, 3)

    wide_input = jax.random.normal(k_wide, (batch, wide_dim), jnp.float32)
    deep_input = jax.random.normal(k_deep, (batch, deep_dim), jnp.float32)
    params = init_params(k_params, wide_dim, deep_dim, hidden_units, output_dim)

    # --- float32 path (exact vs reference) ---
    out = wide_and_deep_forward(wide_input, deep_input, params)
    out = jax.block_until_ready(out)
    ref = reference_forward(wide_input, deep_input, params)
    assert out.shape == (batch, output_dim)
    assert jnp.allclose(out, ref, atol=1e-5, rtol=1e-5), "f32 mismatch vs reference"

    # --- multi-tile / ragged path: batch not divisible by the tile size
    #     (exercises the batch-tiled pipeline, the ragged last block, and the
    #     parallel grid axis) ---
    batch2 = 100
    k_w2, k_d2 = jax.random.split(jax.random.PRNGKey(1))
    wide2 = jax.random.normal(k_w2, (batch2, wide_dim), jnp.float32)
    deep2 = jax.random.normal(k_d2, (batch2, deep_dim), jnp.float32)
    out2 = wide_and_deep_forward(wide2, deep2, params, block_batch=64)
    out2 = jax.block_until_ready(out2)
    ref2 = reference_forward(wide2, deep2, params)
    assert out2.shape == (batch2, output_dim)
    assert jnp.allclose(out2, ref2, atol=1e-5, rtol=1e-5), "tiled f32 mismatch"

    # --- bfloat16 compute path (halves batch-proportional matmul traffic) ---
    out_bf16 = wide_and_deep_forward(
        wide_input, deep_input, params, compute_dtype=jnp.bfloat16
    )
    out_bf16 = jax.block_until_ready(out_bf16)
    assert out_bf16.shape == (batch, output_dim)
    assert jnp.allclose(out_bf16, ref, atol=5e-2), "bf16 mismatch vs reference"

    print("KERNEL_OK")
</pallas_src>

<mosaic_0001>
module attributes {stable_mosaic.version = 11 : i64} {
  func.func @kernel(%arg0: i32, %arg1: memref<8x16xf32, #tpu.memory_space<vmem>>, %arg2: memref<8x32xf32, #tpu.memory_space<vmem>>, %arg3: memref<32x64xf32, #tpu.memory_space<vmem>>, %arg4: memref<1x64xf32, #tpu.memory_space<vmem>>, %arg5: memref<64x32xf32, #tpu.memory_space<vmem>>, %arg6: memref<1x32xf32, #tpu.memory_space<vmem>>, %arg7: memref<32x128xf32, #tpu.memory_space<vmem>>, %arg8: memref<16x128xf32, #tpu.memory_space<vmem>>, %arg9: memref<1x128xf32, #tpu.memory_space<vmem>>, %arg10: memref<8x128xf32, #tpu.memory_space<vmem>>) attributes {dimension_semantics = [#tpu.dimension_semantics<parallel>], iteration_bounds = array<i64: 1>, scalar_prefetch = 0 : i64, scratch_operands = 0 : i64, tpu.core_type = #tpu.core_type<tc>, window_params = [{transform_indices = @transform_0, window_bounds = array<i64: 8, 16>}, {transform_indices = @transform_1, window_bounds = array<i64: 8, 32>}, {pipeline_mode = #tpu.pipeline_mode<synchronous>, transform_indices = @transform_2, window_bounds = array<i64: 32, 64>}, {pipeline_mode = #tpu.pipeline_mode<synchronous>, transform_indices = @transform_3, window_bounds = array<i64: 1, 64>}, {pipeline_mode = #tpu.pipeline_mode<synchronous>, transform_indices = @transform_4, window_bounds = array<i64: 64, 32>}, {pipeline_mode = #tpu.pipeline_mode<synchronous>, transform_indices = @transform_5, window_bounds = array<i64: 1, 32>}, {pipeline_mode = #tpu.pipeline_mode<synchronous>, transform_indices = @transform_6, window_bounds = array<i64: 32, 128>}, {pipeline_mode = #tpu.pipeline_mode<synchronous>, transform_indices = @transform_7, window_bounds = array<i64: 16, 128>}, {pipeline_mode = #tpu.pipeline_mode<synchronous>, transform_indices = @transform_8, window_bounds = array<i64: 1, 128>}, {transform_indices = @transform_9, window_bounds = array<i64: 8, 128>}]} {
    %c0 = arith.constant 0 : index
    %c0_0 = arith.constant 0 : index
    %0 = vector.load %arg2[%c0, %c0_0] : memref<8x32xf32, #tpu.memory_space<vmem>>, vector<8x32xf32>
    %c0_1 = arith.constant 0 : index
    %c0_2 = arith.constant 0 : index
    %1 = vector.load %arg3[%c0_1, %c0_2] : memref<32x64xf32, #tpu.memory_space<vmem>>, vector<32x64xf32>
    %c0_3 = arith.constant 0 : index
    %c0_4 = arith.constant 0 : index
    %2 = vector.load %arg4[%c0_3, %c0_4] : memref<1x64xf32, #tpu.memory_space<vmem>>, vector<1x64xf32>
    %cst = arith.constant dense<0.000000e+00> : vector<8x64xf32>
    %3 = tpu.matmul %0, %1, %cst {dimension_numbers = #tpu.dot_dimension_numbers<[1], [0], [0], [1], [0, 0, 1, 1], [], []>} : vector<8x32xf32>, vector<32x64xf32>, vector<8x64xf32> -> vector<8x64xf32>
    %4 = vector.broadcast %2 : vector<1x64xf32> to vector<8x64xf32>
    %5 = arith.addf %3, %4 : vector<8x64xf32>
    %cst_5 = arith.constant 0.000000e+00 : f32
    %6 = vector.broadcast %cst_5 : f32 to vector<8x64xf32>
    %7 = arith.maximumf %5, %6 : vector<8x64xf32>
    %c0_6 = arith.constant 0 : index
    %c0_7 = arith.constant 0 : index
    %8 = vector.load %arg5[%c0_6, %c0_7] : memref<64x32xf32, #tpu.memory_space<vmem>>, vector<64x32xf32>
    %c0_8 = arith.constant 0 : index
    %c0_9 = arith.constant 0 : index
    %9 = vector.load %arg6[%c0_8, %c0_9] : memref<1x32xf32, #tpu.memory_space<vmem>>, vector<1x32xf32>
    %cst_10 = arith.constant dense<0.000000e+00> : vector<8x32xf32>
    %10 = tpu.matmul %7, %8, %cst_10 {dimension_numbers = #tpu.dot_dimension_numbers<[1], [0], [0], [1], [0, 0, 1, 1], [], []>} : vector<8x64xf32>, vector<64x32xf32>, vector<8x32xf32> -> vector<8x32xf32>
    %11 = vector.broadcast %9 : vector<1x32xf32> to vector<8x32xf32>
    %12 = arith.addf %10, %11 : vector<8x32xf32>
    %cst_11 = arith.constant 0.000000e+00 : f32
    %13 = vector.broadcast %cst_11 : f32 to vector<8x32xf32>
    %14 = arith.maximumf %12, %13 : vector<8x32xf32>
    %c0_12 = arith.constant 0 : index
    %c0_13 = arith.constant 0 : index
    %15 = vector.load %arg7[%c0_12, %c0_13] : memref<32x128xf32, #tpu.memory_space<vmem>>, vector<32x128xf32>
    %c0_14 = arith.constant 0 : index
    %c0_15 = arith.constant 0 : index
    %16 = vector.load %arg8[%c0_14, %c0_15] : memref<16x128xf32, #tpu.memory_space<vmem>>, vector<16x128xf32>
    %c0_16 = arith.constant 0 : index
    %c0_17 = arith.constant 0 : index
    %17 = vector.load %arg9[%c0_16, %c0_17] : memref<1x128xf32, #tpu.memory_space<vmem>>, vector<1x128xf32>
    %cst_18 = arith.constant dense<0.000000e+00> : vector<8x128xf32>
    %18 = tpu.matmul %14, %15, %cst_18 {dimension_numbers = #tpu.dot_dimension_numbers<[1], [0], [0], [1], [0, 0, 1, 1], [], []>} : vector<8x32xf32>, vector<32x128xf32>, vector<8x128xf32> -> vector<8x128xf32>
    %c0_19 = arith.constant 0 : index
    %c0_20 = arith.constant 0 : index
    %19 = vector.load %arg1[%c0_19, %c0_20] : memref<8x16xf32, #tpu.memory_space<vmem>>, vector<8x16xf32>
    %cst_21 = arith.constant dense<0.000000e+00> : vector<8x128xf32>
    %20 = tpu.matmul %19, %16, %cst_21 {dimension_numbers = #tpu.dot_dimension_numbers<[1], [0], [0], [1], [0, 0, 1, 1], [], []>} : vector<8x16xf32>, vector<16x128xf32>, vector<8x128xf32> -> vector<8x128xf32>
    %21 = arith.addf %18, %20 : vector<8x128xf32>
    %22 = vector.broadcast %17 : vector<1x128xf32> to vector<8x128xf32>
    %23 = arith.addf %21, %22 : vector<8x128xf32>
    %24 = arith.negf %23 : vector<8x128xf32>
    %25 = math.exp %24 : vector<8x128xf32>
    %cst_22 = arith.constant 1.000000e+00 : f32
    %26 = vector.broadcast %cst_22 : f32 to vector<8x128xf32>
    %27 = arith.addf %26, %25 : vector<8x128xf32>
    %28 = arith.divf %26, %27 : vector<8x128xf32>
    %c0_23 = arith.constant 0 : index
    %c0_24 = arith.constant 0 : index
    %29 = vector.load %arg10[%c0_23, %c0_24] : memref<8x128xf32, #tpu.memory_space<vmem>>, vector<8x128xf32>
    tpu.vector_store %arg10[%c0_23, %c0_24], %28 {strides = array<i32>} : memref<8x128xf32, #tpu.memory_space<vmem>>, vector<8x128xf32>,
    return
  }
  func.func @transform_0(%arg0: i32) -> (i32, i32) {
    %c0_i32 = arith.constant 0 : i32
    %c0_i32_0 = arith.constant 0 : i32
    return %arg0, %c0_i32 : i32, i32
  }
  func.func @transform_1(%arg0: i32) -> (i32, i32) {
    %c0_i32 = arith.constant 0 : i32
    %c0_i32_0 = arith.constant 0 : i32
    return %arg0, %c0_i32 : i32, i32
  }
  func.func @transform_2(%arg0: i32) -> (i32, i32) {
    %c0_i32 = arith.constant 0 : i32
    %c0_i32_0 = arith.constant 0 : i32
    %c0_i32_1 = arith.constant 0 : i32
    return %c0_i32, %c0_i32_0 : i32, i32
  }
  func.func @transform_3(%arg0: i32) -> (i32, i32) {
    %c0_i32 = arith.constant 0 : i32
    %c0_i32_0 = arith.constant 0 : i32
    %c0_i32_1 = arith.constant 0 : i32
    return %c0_i32, %c0_i32_0 : i32, i32
  }
  func.func @transform_4(%arg0: i32) -> (i32, i32) {
    %c0_i32 = arith.constant 0 : i32
    %c0_i32_0 = arith.constant 0 : i32
    %c0_i32_1 = arith.constant 0 : i32
    return %c0_i32, %c0_i32_0 : i32, i32
  }
  func.func @transform_5(%arg0: i32) -> (i32, i32) {
    %c0_i32 = arith.constant 0 : i32
    %c0_i32_0 = arith.constant 0 : i32
    %c0_i32_1 = arith.constant 0 : i32
    return %c0_i32, %c0_i32_0 : i32, i32
  }
  func.func @transform_6(%arg0: i32) -> (i32, i32) {
    %c0_i32 = arith.constant 0 : i32
    %c0_i32_0 = arith.constant 0 : i32
    %c0_i32_1 = arith.constant 0 : i32
    return %c0_i32, %c0_i32_0 : i32, i32
  }
  func.func @transform_7(%arg0: i32) -> (i32, i32) {
    %c0_i32 = arith.constant 0 : i32
    %c0_i32_0 = arith.constant 0 : i32
    %c0_i32_1 = arith.constant 0 : i32
    return %c0_i32, %c0_i32_0 : i32, i32
  }
  func.func @transform_8(%arg0: i32) -> (i32, i32) {
    %c0_i32 = arith.constant 0 : i32
    %c0_i32_0 = arith.constant 0 : i32
    %c0_i32_1 = arith.constant 0 : i32
    return %c0_i32, %c0_i32_0 : i32, i32
  }
  func.func @transform_9(%arg0: i32) -> (i32, i32) {
    %c0_i32 = arith.constant 0 : i32
    %c0_i32_0 = arith.constant 0 : i32
    return %arg0, %c0_i32 : i32, i32
  }
}

</mosaic_0001>

<bundles_post_ra>
// kernel: tpu_custom_call.1
= control target key start
LH: loop header
LB: loop body
LE: loop exit
PB: predicated region body
PF: predicated region fallthrough
CT: control target
= control target key end

     0   :  { %v500_v1 = vmov 0.0   ;;  %vm501_vm0 = vmmov 0   ;;  %s653_s0 = inlined_call_operand.vmem [shape: f32[8,16], index: 0, kind: input, shape index: {}]   ;;  %s654_s1 = inlined_call_operand.vmem [shape: f32[8,32], index: 1, kind: input, shape index: {}]   ;;  %s655_s2 = inlined_call_operand.vmem [shape: f32[32,64], index: 2, kind: input, shape index: {}]   ;;  %s656_s3 = inlined_call_operand.vmem [shape: f32[1,64], index: 3, kind: input, shape index: {}]   ;;  %s657_s4 = inlined_call_operand.vmem [shape: f32[64,32], index: 4, kind: input, shape index: {}]   ;;  %s658_s5 = inlined_call_operand.vmem [shape: f32[1,32], index: 5, kind: input, shape index: {}]   ;;  %s659_s6 = inlined_call_operand.vmem [shape: f32[32,128], index: 6, kind: input, shape index: {}]   ;;  %s660_s7 = inlined_call_operand.vmem [shape: f32[16,128], index: 7, kind: input, shape index: {}]   ;;  %s661_s8 = inlined_call_operand.vmem [shape: f32[1,128], index: 8, kind: input, shape index: {}]   ;;  %s662_s9 = inlined_call_operand.hbm [shape: f32[8,128], index: 9, kind: output, shape index: {}]  }
   0x1   :  { %v37_v0 = vld [vmem:[%s655_s2 + $0x18] sm:$0xff]  ;;  %423 = vmatprep.subr.mxu0 %v500_v1  ;;  %v36_v2 = vld [vmem:[%s655_s2 + $0x10] sm:$0xff]  ;;  %431 = vmatprep.mubr.msk.f32.mxu0 %vm501_vm0, %v500_v1  ;;  %v35_v5 = vld [vmem:[%s655_s2 + $0x8] sm:$0xff] }
   0x2   :  { %v127_v3 = vld [vmem:[%s657_s4 + $0x38] sm:$0xff]  ;;  %424 = vmatpush3.msra.mxu0 %v37_v0  ;;  %434 = vmatprep.subr.mxu1 %v500_v1  ;;  %v126_v4 = vld [vmem:[%s657_s4 + $0x30] sm:$0xff] }
   0x3   :  { %425 = vmatprep.subr.mxu0 %v500_v1  ;;  %435 = vmatpush3.msra.mxu1 %v127_v3 }
   0x4   :  { %14 = vsyncpa [#allocation3], 0  ;;  %426 = vmatpush3.msra.mxu0 %v36_v2  ;;  %436 = vmatprep.subr.mxu1 %v500_v1  ;;  %v125_v6 = vld [vmem:[%s657_s4 + $0x28] sm:$0xff]  ;;  %v34_v7 = vld [vmem:[%s655_s2] sm:$0xff]  ;;  %vm45_vm1 = vcmask 261120   ;;  %vm218_vm2 = vcmask 130048  }
   0x5   :  { %427 = vmatprep.subr.mxu0 %v500_v1  ;;  %437 = vmatpush3.msra.mxu1 %v126_v4  ;;  %v33_v8 = vld [vmem:[%s654_s1] sm:$0xff]  ;;  %v123_v10 = vld [vmem:[%s657_s4 + $0x18] sm:$0xff]  ;;  %v122_v11 = vld [vmem:[%s657_s4 + $0x10] sm:$0xff]  ;;  %vm135_vm3 = vcmask 523264  }
   0x6   :  { %428 = vmatpush3.msra.mxu0 %v35_v5  ;;  %438 = vmatprep.subr.mxu1 %v500_v1  ;;  %v124_v9 = vld [vmem:[%s657_s4 + $0x20] sm:$0xff]  ;;  %v121_v12 = vld [vmem:[%s657_s4 + $0x8] sm:$0xff]  ;;  %v213_v17 = vld [vmem:[%s659_s6 + $0x18] sm:$0xff] }
   0x7   :  { %429 = vmatprep.subr.mxu0 %v500_v1  ;;  %439 = vmatpush3.msra.mxu1 %v125_v6  ;;  %v120_v13 = vld [vmem:[%s657_s4] sm:$0xff]  ;;  %v215_v14 = vld [vmem:[%s660_s7 + $0x8] sm:$0xff]  ;;  %v212_v23 = vld [vmem:[%s659_s6 + $0x10] sm:$0xff] }
   0x8   :  { %430 = vmatpush3.msra.mxu0 %v34_v7  ;;  %440 = vmatprep.subr.mxu1 %v500_v1  ;;  %v214_v15 = vld [vmem:[%s660_s7] sm:$0xff]  ;;  %v211_v24 = vld [vmem:[%s659_s6 + $0x8] sm:$0xff] }
   0x9   :  { %432 = vmatmul.mubr.msk.f32.vlgmr.msra.gmra.mxu0 %vm45_vm1, %v33_v8  ;;  %441 = vmatpush3.msra.mxu1 %v124_v9  ;;  %v217_v16 = vld [vmem:[%s653_s0] sm:$0xff] }
   0xa   :  { %442 = vmatprep.subr.mxu1 %v500_v1  ;;  %450 = vmatprep.mubr.msk.f32.mxu1 %vm501_vm0, %v500_v1  ;;  %v393_v18 = vld [vmem:[%s656_s3] ss:$0 sm:$0xff] }
   0xb   :  { %443 = vmatpush3.msra.mxu1 %v123_v10  ;;  %453 = vmatprep.subr.mxu0 %v500_v1  ;;  %v210_v25 = vld [vmem:[%s659_s6] sm:$0xff] }
   0xc   :  { %444 = vmatprep.subr.mxu1 %v500_v1  ;;  %457 = vmatprep.mubr.msk.f32.mxu0 %vm501_vm0, %v500_v1  ;;  %v395_v28 = vld [vmem:[%s658_s5] ss:$0 sm:$0xff]  ;;  %s502_s5 = smov [#allocation2]  }
   0xd   :  { %445 = vmatpush3.msra.mxu1 %v122_v11  ;;  %454 = vmatpush3.msra.mxu0 %v215_v14  ;;  %v399_v33 = vld [vmem:[%s661_s8] ss:$0 sm:$0xff]  ;;  %s385_s6 = sshll.u32 %s502_s5, 4  ;;  %s386_s6 = int_to_ptr.vmem [resolvable:$true] %s385_s6 }
   0xe   :  { %446 = vmatprep.subr.mxu1 %v500_v1  ;;  %455 = vmatprep.subr.mxu0 %v500_v1  ;;  %s478_s27 = scalar_lea.vmem %s386_s6, 128  ;;  %p483_p1 = scmp.lt.s32.totalorder %s386_s6, %s386_s6 }
   0xf   :  { %447 = vmatpush3.msra.mxu1 %v121_v12  ;;  %456 = vmatpush3.msra.mxu0 %v214_v15  ;;  %p479_p0 = scmp.ne.s32.totalorder %s386_s6, %s478_s27  ;;  %p484_p2 = scmp.lt.s32.totalorder %s478_s27, %s478_s27 }
  0x10   :  { %448 = vmatprep.subr.mxu1 %v500_v1  ;;  %458 = vmatmul.mubr.msk.f32.vlgmr.msra.gmra.mxu0 %vm218_vm2, %v217_v16 }
  0x11   :  { %449 = vmatpush3.msra.mxu1 %v120_v13  ;;  %460 = vmatprep.subr.mxu0 %v500_v1  ;;  %p485_p3 = por %p484_p2, %p483_p1 }
  0x12   :  { %461 = vmatpush3.msra.mxu0 %v213_v17  ;;  %468 = vmatprep.mubr.msk.f32.mxu0 %vm501_vm0, %v500_v1 }
  0x13   :  { %462 = vmatprep.subr.mxu0 %v500_v1  ;;  %p486_p4 = pnand %p485_p3, %p479_p0 }
  0x14   :  { %463 = vmatpush3.msra.mxu0 %v212_v23 }
  0x15   :  { %464 = vmatprep.subr.mxu0 %v500_v1 }
  0x16   :  { %465 = vmatpush3.msra.mxu0 %v211_v24 }
  0x17   :  { %466 = vmatprep.subr.mxu0 %v500_v1 }
  0x18   :  { %467 = vmatpush3.msra.mxu0 %v210_v25 }
  0xc9   :  { %v115_v19 = vpop.f32.mrf.mxu0 }
  0xca   :  { %v116_v20 = vadd.f32 %v393_v18, %v115_v19 }
  0xcb   :  { %v433_v21 = vpop.f32.mrf.mxu0 }
  0xcc   :  { %v119_v22 = vmax.f32 %v116_v20, 0.0 }
  0xce   :  { %451 = vmatmul.mubr.msk.f32.vlgmr.msra.gmra.mxu1 %vm135_vm3, %v119_v22 }
  0xd0   :  { %v288_v26 = vpop.f32.mrf.mxu0 }
  0xd2   :  { %v459_v27 = vpop.f32.mrf.mxu0 }
 0x18e   :  { %v205_v29 = vpop.f32.mrf.mxu1 }
 0x18f   :  { %v206_v30 = vadd.f32 %v395_v28, %v205_v29 }
 0x190   :  { %v452_v31 = vpop.f32.mrf.mxu1 }
 0x191   :  { %v209_v32 = vmax.f32 %v206_v30, 0.0 }
 0x193   :  { %469 = vmatmul.mubr.msk.f32.vlgmr.msra.gmra.mxu0 %vm45_vm1, %v209_v32 }
 0x253   :  { %v361_v34 = vpop.f32.mrf.mxu0 }
 0x254   :  { %v362_v35 = vadd.f32 %v361_v34, %v288_v26 }
 0x255   :  { %v470_v36 = vpop.f32.mrf.mxu0 }
 0x256   :  { %v371_v37 = vadd.f32 %v399_v33, %v362_v35 }
 0x258   :  { %v400_v38 = vmul.f32 -1.442695, %v371_v37 }
 0x25a   :  { %474 = vpow2.f32 %v400_v38 }
 0x267   :  { %v475_v39 = vpop.eup %474 }
 0x268   :  { %v375_v40 = vadd.f32 1.0, %v475_v39 }
 0x26a   :  { %476 = vrcp.f32 %v375_v40 }
 0x277   :  { %v477_v41 = vpop.eup %476 }
 0x278   :  { %378 = vst [vmem:[#allocation2] sm:$0xff] %v477_v41 }
 0x279   :  { %489 = shalt.err (!%p486_p4)
}
 0x27a   :  { %388 = dma.vmem_to_hbm [thread:$0]  %s386_s6, 128, %s662_s9, [#allocation3]  }
 0x27b   :  { %498 = dma.done.wait [#allocation3], 128  }
 0x27c   :  { %499 = vsyncadd [#allocation3], 4294967168 }
 0x27d   :  { %392 = vsyncpa [#allocation3], 1 }

</bundles_post_ra>
